<compile_context>
chip_gen: v7x
topology: tpu7x:2x2x1
jax: 0.10.0
libtpu: 0.0.40
codegen_flags: <defaults>
</compile_context>

<pallas_src>
import functools

import jax
import jax.numpy as jnp
import numpy as np
from jax import lax
from jax.experimental import pallas as pl
from jax.experimental.pallas import tpu as pltpu


def _fused_additive_coupling_kernel(w_dim, x_ref, w_ref, b_ref, m_ref, o_ref):
    """One batch element of y = AdditiveCoupling(F, G)(x), fully fused.

    x_ref : (1, 2, CP, HW)   channel-padded halves [x1; x2]; lane axis = H*W
    w_ref : (2, CP, 9*CP)    packed conv weights [F; G]; column block t holds
                             the (Cout, Cin) matrix of 3x3 tap t = kh*3+kw
    b_ref : (2, CP, 1)       biases [F; G]
    m_ref : (9, 1, HW)       0/1 halo-validity mask per tap (SAME zero padding)
    o_ref : (1, 2, Ch, HW)   output halves [y1; y2] (unpadded channels)
    """
    cp = x_ref.shape[2]
    hw = x_ref.shape[3]
    ch = o_ref.shape[2]

    x1 = x_ref[0, 0].astype(jnp.float32)          # (CP, HW)
    x2 = x_ref[0, 1].astype(jnp.float32)

    # Halo masks are constants; load once, reuse for both convs.
    masks = [m_ref[t] for t in range(9)]          # each (1, HW)

    def conv3x3_same(inp, which):
        """bias + Conv2d(inp, 3x3, padding=SAME), one MXU matmul."""
        taps = []
        for kh in range(3):
            for kw in range(3):
                dh, dw = kh - 1, kw - 1
                if dh == 0 and dw == 0:
                    taps.append(inp)                                  # centre tap
                else:
                    off = dh * w_dim + dw
                    shifted = pltpu.roll(inp, shift=(-off) % hw, axis=1)
                    taps.append(shifted * masks[kh * 3 + kw])         # zero halo
        # Tile-aligned sublane stack: (9*CP, HW).  Stays in vregs.
        stacked = jnp.concatenate(taps, axis=0)
        # Single (CP, 9*CP) @ (9*CP, HW) contraction on the MXU, f32 accumulate.
        acc = jnp.dot(w_ref[which], stacked, preferred_element_type=jnp.float32)
        return acc + b_ref[which]                                     # (CP,1) bcast

    y1 = x1 + conv3x3_same(x2, 0)                 # y1 = x1 + F(x2)
    y2 = x2 + conv3x3_same(y1, 1)                 # y2 = x2 + G(y1); y1 never hits HBM

    o_ref[0, 0] = y1[:ch, :].astype(o_ref.dtype)
    o_ref[0, 1] = y2[:ch, :].astype(o_ref.dtype)


def _pack_conv_weight(w_hwio, cp):
    """Pack one 3x3 conv's weights as (cp, 9*cp) float32.

    Column block t = kh*3 + kw holds the (Cout, Cin) matrix of tap (kh, kw),
    zero-padded to (cp, cp).
    """
    kh, kw, cin, cout = w_hwio.shape
    taps = jnp.transpose(w_hwio.astype(jnp.float32), (0, 1, 3, 2))
    taps = taps.reshape(kh * kw, cout, cin)
    packed = jnp.zeros((cp, kh * kw * cp), jnp.float32)
    for t in range(kh * kw):
        packed = packed.at[:cout, t * cp: t * cp + cin].set(taps[t])
    return packed


def _pack_bias(bias, cp):
    return jnp.zeros((cp, 1), jnp.float32).at[: bias.shape[0], 0].set(
        bias.astype(jnp.float32))


def _halo_masks(h, w):
    """(9, 1, h*w) 0/1 masks: tap (dh, dw) is valid where the shifted pixel
    stays inside the image (the SAME-conv zero-padding region is masked)."""
    hh = np.arange(h * w) // w
    ww = np.arange(h * w) % w
    out = np.zeros((9, 1, h * w), np.float32)
    t = 0
    for dh in (-1, 0, 1):
        for dw in (-1, 0, 1):
            valid = ((hh + dh >= 0) & (hh + dh < h) &
                     (ww + dw >= 0) & (ww + dw < w))
            out[t, 0] = valid.astype(np.float32)
            t += 1
    return jnp.asarray(out)


def invertible_module_wrapper_forward(x_nchw, params):
    """Forward of InvertibleModuleWrapper(AdditiveCoupling(F, G)) on TPU."""
    b, c, h, w = x_nchw.shape
    assert c % 2 == 0, "additive coupling requires an even channel count"
    ch = c // 2
    hw = h * w
    cp = ((ch + 7) // 8) * 8      # round channels up to the f32 sublane tile

    assert params["wf"].shape == (3, 3, ch, ch)
    assert params["wg"].shape == (3, 3, ch, ch)

    # (B, C, H, W) -> (B, 2, Ch, H*W): free, contiguous reshape that splits the
    # two coupling halves and flattens space onto the lane axis.
    x = x_nchw.reshape(b, 2, ch, hw)
    if cp != ch:
        # Tiny-channel case only (Ch % 8 != 0): align the contraction dim to the
        # sublane tile so the tap stack / matmul operands are tile shaped.
        x = jnp.pad(x, ((0, 0), (0, 0), (0, cp - ch), (0, 0)))

    w_packed = jnp.stack([_pack_conv_weight(params["wf"], cp),
                          _pack_conv_weight(params["wg"], cp)])   # (2, cp, 9*cp)
    b_packed = jnp.stack([_pack_bias(params["bf"], cp),
                          _pack_bias(params["bg"], cp)])          # (2, cp, 1)
    tap_masks = _halo_masks(h, w)                                 # (9, 1, hw)

    kernel = functools.partial(_fused_additive_coupling_kernel, w)

    out = pl.pallas_call(
        kernel,
        out_shape=jax.ShapeDtypeStruct((b, 2, ch, hw), jnp.float32),
        grid=(b,),
        in_specs=[
            pl.BlockSpec((1, 2, cp, hw), lambda i: (i, 0, 0, 0)),
            pl.BlockSpec((2, cp, 9 * cp), lambda i: (0, 0, 0)),
            pl.BlockSpec((2, cp, 1), lambda i: (0, 0, 0)),
            pl.BlockSpec((9, 1, hw), lambda i: (0, 0, 0)),
        ],
        out_specs=pl.BlockSpec((1, 2, ch, hw), lambda i: (i, 0, 0, 0)),
        compiler_params=pltpu.CompilerParams(
            dimension_semantics=("parallel",)),   # v7x: batch across 2 TCs
    )(x, w_packed, b_packed, tap_masks)
    # NOTE: at realistic H*W / channel counts the flattened spatial axis should
    # additionally be tiled (second grid axis), sized against 64 MiB VMEM on
    # v7x / 128 MiB on v5e/v6e; not needed at these shapes.

    # (B, 2, Ch, H*W) -> (B, C, H, W): free reshape; channel order already
    # matches concat([y1, y2], channel dim).
    return out.reshape(b, c, h, w)
    # TODO(synk): InvertibleCheckpointFunction's backward-only machinery
    # (input reconstruction via fn.inverse, RNG-state restore, storage resize)
    # has no forward-value equivalent and is intentionally not modelled.


def _ref_forward(x_nchw, params):
    """Pure-JAX reference (lax.conv) for correctness checking."""
    x = jnp.transpose(x_nchw.astype(jnp.float32), (0, 2, 3, 1))
    c = x.shape[-1]
    x1, x2 = x[..., : c // 2], x[..., c // 2:]

    def conv(v, w, bias):
        return lax.conv_general_dilated(
            v, w, window_strides=(1, 1), padding="SAME",
            dimension_numbers=("NHWC", "HWIO", "NHWC")) + bias

    y1 = x1 + conv(x2, params["wf"], params["bf"])
    y2 = x2 + conv(y1, params["wg"], params["bg"])
    return jnp.transpose(jnp.concatenate([y1, y2], axis=-1), (0, 3, 1, 2))


if __name__ == "__main__":
    B, C, H, W = 2, 4, 16, 16          # NCHW, matching the PyTorch convention
    Ch = C // 2

    key = jax.random.PRNGKey(0)
    kx, kwf, kbf, kwg, kbg = jax.random.split(key, 5)

    x = jax.random.normal(kx, (B, C, H, W), dtype=jnp.float32)

    # Deterministic synthetic Conv2d(Ch, Ch, 3) parameters (HWIO layout).
    fan_in = Ch * 3 * 3
    bound = 1.0 / np.sqrt(fan_in)
    params = {
        "wf": jax.random.uniform(kwf, (3, 3, Ch, Ch), jnp.float32, -bound, bound),
        "bf": jax.random.uniform(kbf, (Ch,), jnp.float32, -bound, bound),
        "wg": jax.random.uniform(kwg, (3, 3, Ch, Ch), jnp.float32, -bound, bound),
        "bg": jax.random.uniform(kbg, (Ch,), jnp.float32, -bound, bound),
    }

    y = jax.block_until_ready(invertible_module_wrapper_forward(x, params))
    y_ref = jax.block_until_ready(_ref_forward(x, params))

    np.testing.assert_allclose(np.asarray(y), np.asarray(y_ref),
                               rtol=1e-5, atol=1e-5)
    assert y.shape == (B, C, H, W) and y.dtype == jnp.float32

    print("KERNEL_OK")
</pallas_src>

<mosaic_0001>
module attributes {stable_mosaic.version = 11 : i64} {
  func.func @_fused_additive_coupling_kernel(%arg0: i32, %arg1: memref<1x2x8x256xf32, #tpu.memory_space<vmem>>, %arg2: memref<2x8x72xf32, #tpu.memory_space<vmem>>, %arg3: memref<2x8x1xf32, #tpu.memory_space<vmem>>, %arg4: memref<9x1x256xf32, #tpu.memory_space<vmem>>, %arg5: memref<1x2x2x256xf32, #tpu.memory_space<vmem>>) attributes {dimension_semantics = [#tpu.dimension_semantics<parallel>], iteration_bounds = array<i64: 2>, scalar_prefetch = 0 : i64, scratch_operands = 0 : i64, tpu.core_type = #tpu.core_type<tc>, window_params = [{transform_indices = @transform_0, window_bounds = array<i64: 1, 2, 8, 256>}, {pipeline_mode = #tpu.pipeline_mode<synchronous>, transform_indices = @transform_1, window_bounds = array<i64: 2, 8, 72>}, {pipeline_mode = #tpu.pipeline_mode<synchronous>, transform_indices = @transform_2, window_bounds = array<i64: 2, 8, 1>}, {pipeline_mode = #tpu.pipeline_mode<synchronous>, transform_indices = @transform_3, window_bounds = array<i64: 9, 1, 256>}, {transform_indices = @transform_4, window_bounds = array<i64: 1, 2, 2, 256>}]} {
    %c0 = arith.constant 0 : index
    %c0_0 = arith.constant 0 : index
    %c0_1 = arith.constant 0 : index
    %c0_2 = arith.constant 0 : index
    %0 = vector.load %arg1[%c0, %c0_0, %c0_1, %c0_2] : memref<1x2x8x256xf32, #tpu.memory_space<vmem>>, vector<1x1x8x256xf32>
    %1 = vector.shape_cast %0 : vector<1x1x8x256xf32> to vector<8x256xf32>
    %c0_3 = arith.constant 0 : index
    %c1 = arith.constant 1 : index
    %c0_4 = arith.constant 0 : index
    %c0_5 = arith.constant 0 : index
    %2 = vector.load %arg1[%c0_3, %c1, %c0_4, %c0_5] : memref<1x2x8x256xf32, #tpu.memory_space<vmem>>, vector<1x1x8x256xf32>
    %3 = vector.shape_cast %2 : vector<1x1x8x256xf32> to vector<8x256xf32>
    %c0_6 = arith.constant 0 : index
    %c0_7 = arith.constant 0 : index
    %c0_8 = arith.constant 0 : index
    %4 = vector.load %arg4[%c0_6, %c0_7, %c0_8] : memref<9x1x256xf32, #tpu.memory_space<vmem>>, vector<1x1x256xf32>
    %5 = vector.shape_cast %4 : vector<1x1x256xf32> to vector<1x256xf32>
    %c1_9 = arith.constant 1 : index
    %c0_10 = arith.constant 0 : index
    %c0_11 = arith.constant 0 : index
    %6 = vector.load %arg4[%c1_9, %c0_10, %c0_11] : memref<9x1x256xf32, #tpu.memory_space<vmem>>, vector<1x1x256xf32>
    %7 = vector.shape_cast %6 : vector<1x1x256xf32> to vector<1x256xf32>
    %c2 = arith.constant 2 : index
    %c0_12 = arith.constant 0 : index
    %c0_13 = arith.constant 0 : index
    %8 = vector.load %arg4[%c2, %c0_12, %c0_13] : memref<9x1x256xf32, #tpu.memory_space<vmem>>, vector<1x1x256xf32>
    %9 = vector.shape_cast %8 : vector<1x1x256xf32> to vector<1x256xf32>
    %c3 = arith.constant 3 : index
    %c0_14 = arith.constant 0 : index
    %c0_15 = arith.constant 0 : index
    %10 = vector.load %arg4[%c3, %c0_14, %c0_15] : memref<9x1x256xf32, #tpu.memory_space<vmem>>, vector<1x1x256xf32>
    %11 = vector.shape_cast %10 : vector<1x1x256xf32> to vector<1x256xf32>
    %c5 = arith.constant 5 : index
    %c0_16 = arith.constant 0 : index
    %c0_17 = arith.constant 0 : index
    %12 = vector.load %arg4[%c5, %c0_16, %c0_17] : memref<9x1x256xf32, #tpu.memory_space<vmem>>, vector<1x1x256xf32>
    %13 = vector.shape_cast %12 : vector<1x1x256xf32> to vector<1x256xf32>
    %c6 = arith.constant 6 : index
    %c0_18 = arith.constant 0 : index
    %c0_19 = arith.constant 0 : index
    %14 = vector.load %arg4[%c6, %c0_18, %c0_19] : memref<9x1x256xf32, #tpu.memory_space<vmem>>, vector<1x1x256xf32>
    %15 = vector.shape_cast %14 : vector<1x1x256xf32> to vector<1x256xf32>
    %c7 = arith.constant 7 : index
    %c0_20 = arith.constant 0 : index
    %c0_21 = arith.constant 0 : index
    %16 = vector.load %arg4[%c7, %c0_20, %c0_21] : memref<9x1x256xf32, #tpu.memory_space<vmem>>, vector<1x1x256xf32>
    %17 = vector.shape_cast %16 : vector<1x1x256xf32> to vector<1x256xf32>
    %c8 = arith.constant 8 : index
    %c0_22 = arith.constant 0 : index
    %c0_23 = arith.constant 0 : index
    %18 = vector.load %arg4[%c8, %c0_22, %c0_23] : memref<9x1x256xf32, #tpu.memory_space<vmem>>, vector<1x1x256xf32>
    %19 = vector.shape_cast %18 : vector<1x1x256xf32> to vector<1x256xf32>
    %c17_i32 = arith.constant 17 : i32
    %20 = tpu.dynamic_rotate %3 by %c17_i32 dim 1 : vector<8x256xf32>, i32 -> vector<8x256xf32>
    %21 = vector.broadcast %5 : vector<1x256xf32> to vector<8x256xf32>
    %22 = arith.mulf %20, %21 : vector<8x256xf32>
    %c16_i32 = arith.constant 16 : i32
    %23 = tpu.dynamic_rotate %3 by %c16_i32 dim 1 : vector<8x256xf32>, i32 -> vector<8x256xf32>
    %24 = vector.broadcast %7 : vector<1x256xf32> to vector<8x256xf32>
    %25 = arith.mulf %23, %24 : vector<8x256xf32>
    %c15_i32 = arith.constant 15 : i32
    %26 = tpu.dynamic_rotate %3 by %c15_i32 dim 1 : vector<8x256xf32>, i32 -> vector<8x256xf32>
    %27 = vector.broadcast %9 : vector<1x256xf32> to vector<8x256xf32>
    %28 = arith.mulf %26, %27 : vector<8x256xf32>
    %c1_i32 = arith.constant 1 : i32
    %29 = tpu.dynamic_rotate %3 by %c1_i32 dim 1 : vector<8x256xf32>, i32 -> vector<8x256xf32>
    %30 = vector.broadcast %11 : vector<1x256xf32> to vector<8x256xf32>
    %31 = arith.mulf %29, %30 : vector<8x256xf32>
    %c255_i32 = arith.constant 255 : i32
    %32 = tpu.dynamic_rotate %3 by %c255_i32 dim 1 : vector<8x256xf32>, i32 -> vector<8x256xf32>
    %33 = vector.broadcast %13 : vector<1x256xf32> to vector<8x256xf32>
    %34 = arith.mulf %32, %33 : vector<8x256xf32>
    %c241_i32 = arith.constant 241 : i32
    %35 = tpu.dynamic_rotate %3 by %c241_i32 dim 1 : vector<8x256xf32>, i32 -> vector<8x256xf32>
    %36 = vector.broadcast %15 : vector<1x256xf32> to vector<8x256xf32>
    %37 = arith.mulf %35, %36 : vector<8x256xf32>
    %c240_i32 = arith.constant 240 : i32
    %38 = tpu.dynamic_rotate %3 by %c240_i32 dim 1 : vector<8x256xf32>, i32 -> vector<8x256xf32>
    %39 = vector.broadcast %17 : vector<1x256xf32> to vector<8x256xf32>
    %40 = arith.mulf %38, %39 : vector<8x256xf32>
    %c239_i32 = arith.constant 239 : i32
    %41 = tpu.dynamic_rotate %3 by %c239_i32 dim 1 : vector<8x256xf32>, i32 -> vector<8x256xf32>
    %42 = vector.broadcast %19 : vector<1x256xf32> to vector<8x256xf32>
    %43 = arith.mulf %41, %42 : vector<8x256xf32>
    %44 = tpu.concatenate %22, %25, %28, %31, %3, %34, %37, %40, %43 in 0 : vector<8x256xf32>, vector<8x256xf32>, vector<8x256xf32>, vector<8x256xf32>, vector<8x256xf32>, vector<8x256xf32>, vector<8x256xf32>, vector<8x256xf32>, vector<8x256xf32> -> vector<72x256xf32>
    %c0_24 = arith.constant 0 : index
    %c0_25 = arith.constant 0 : index
    %c0_26 = arith.constant 0 : index
    %45 = vector.load %arg2[%c0_24, %c0_25, %c0_26] : memref<2x8x72xf32, #tpu.memory_space<vmem>>, vector<1x8x72xf32>
    %46 = vector.shape_cast %45 : vector<1x8x72xf32> to vector<8x72xf32>
    %cst = arith.constant dense<0.000000e+00> : vector<8x256xf32>
    %47 = tpu.matmul %46, %44, %cst {dimension_numbers = #tpu.dot_dimension_numbers<[1], [0], [0], [1], [0, 0, 1, 1], [], []>} : vector<8x72xf32>, vector<72x256xf32>, vector<8x256xf32> -> vector<8x256xf32>
    %c0_27 = arith.constant 0 : index
    %c0_28 = arith.constant 0 : index
    %c0_29 = arith.constant 0 : index
    %48 = vector.load %arg3[%c0_27, %c0_28, %c0_29] : memref<2x8x1xf32, #tpu.memory_space<vmem>>, vector<1x8x1xf32>
    %49 = vector.shape_cast %48 : vector<1x8x1xf32> to vector<8x1xf32>
    %50 = vector.broadcast %49 : vector<8x1xf32> to vector<8x256xf32>
    %51 = arith.addf %47, %50 : vector<8x256xf32>
    %52 = arith.addf %1, %51 : vector<8x256xf32>
    %c17_i32_30 = arith.constant 17 : i32
    %53 = tpu.dynamic_rotate %52 by %c17_i32_30 dim 1 : vector<8x256xf32>, i32 -> vector<8x256xf32>
    %54 = vector.broadcast %5 : vector<1x256xf32> to vector<8x256xf32>
    %55 = arith.mulf %53, %54 : vector<8x256xf32>
    %c16_i32_31 = arith.constant 16 : i32
    %56 = tpu.dynamic_rotate %52 by %c16_i32_31 dim 1 : vector<8x256xf32>, i32 -> vector<8x256xf32>
    %57 = vector.broadcast %7 : vector<1x256xf32> to vector<8x256xf32>
    %58 = arith.mulf %56, %57 : vector<8x256xf32>
    %c15_i32_32 = arith.constant 15 : i32
    %59 = tpu.dynamic_rotate %52 by %c15_i32_32 dim 1 : vector<8x256xf32>, i32 -> vector<8x256xf32>
    %60 = vector.broadcast %9 : vector<1x256xf32> to vector<8x256xf32>
    %61 = arith.mulf %59, %60 : vector<8x256xf32>
    %c1_i32_33 = arith.constant 1 : i32
    %62 = tpu.dynamic_rotate %52 by %c1_i32_33 dim 1 : vector<8x256xf32>, i32 -> vector<8x256xf32>
    %63 = vector.broadcast %11 : vector<1x256xf32> to vector<8x256xf32>
    %64 = arith.mulf %62, %63 : vector<8x256xf32>
    %c255_i32_34 = arith.constant 255 : i32
    %65 = tpu.dynamic_rotate %52 by %c255_i32_34 dim 1 : vector<8x256xf32>, i32 -> vector<8x256xf32>
    %66 = vector.broadcast %13 : vector<1x256xf32> to vector<8x256xf32>
    %67 = arith.mulf %65, %66 : vector<8x256xf32>
    %c241_i32_35 = arith.constant 241 : i32
    %68 = tpu.dynamic_rotate %52 by %c241_i32_35 dim 1 : vector<8x256xf32>, i32 -> vector<8x256xf32>
    %69 = vector.broadcast %15 : vector<1x256xf32> to vector<8x256xf32>
    %70 = arith.mulf %68, %69 : vector<8x256xf32>
    %c240_i32_36 = arith.constant 240 : i32
    %71 = tpu.dynamic_rotate %52 by %c240_i32_36 dim 1 : vector<8x256xf32>, i32 -> vector<8x256xf32>
    %72 = vector.broadcast %17 : vector<1x256xf32> to vector<8x256xf32>
    %73 = arith.mulf %71, %72 : vector<8x256xf32>
    %c239_i32_37 = arith.constant 239 : i32
    %74 = tpu.dynamic_rotate %52 by %c239_i32_37 dim 1 : vector<8x256xf32>, i32 -> vector<8x256xf32>
    %75 = vector.broadcast %19 : vector<1x256xf32> to vector<8x256xf32>
    %76 = arith.mulf %74, %75 : vector<8x256xf32>
    %77 = tpu.concatenate %55, %58, %61, %64, %52, %67, %70, %73, %76 in 0 : vector<8x256xf32>, vector<8x256xf32>, vector<8x256xf32>, vector<8x256xf32>, vector<8x256xf32>, vector<8x256xf32>, vector<8x256xf32>, vector<8x256xf32>, vector<8x256xf32> -> vector<72x256xf32>
    %c1_38 = arith.constant 1 : index
    %c0_39 = arith.constant 0 : index
    %c0_40 = arith.constant 0 : index
    %78 = vector.load %arg2[%c1_38, %c0_39, %c0_40] : memref<2x8x72xf32, #tpu.memory_space<vmem>>, vector<1x8x72xf32>
    %79 = vector.shape_cast %78 : vector<1x8x72xf32> to vector<8x72xf32>
    %cst_41 = arith.constant dense<0.000000e+00> : vector<8x256xf32>
    %80 = tpu.matmul %79, %77, %cst_41 {dimension_numbers = #tpu.dot_dimension_numbers<[1], [0], [0], [1], [0, 0, 1, 1], [], []>} : vector<8x72xf32>, vector<72x256xf32>, vector<8x256xf32> -> vector<8x256xf32>
    %c1_42 = arith.constant 1 : index
    %c0_43 = arith.constant 0 : index
    %c0_44 = arith.constant 0 : index
    %81 = vector.load %arg3[%c1_42, %c0_43, %c0_44] : memref<2x8x1xf32, #tpu.memory_space<vmem>>, vector<1x8x1xf32>
    %82 = vector.shape_cast %81 : vector<1x8x1xf32> to vector<8x1xf32>
    %83 = vector.broadcast %82 : vector<8x1xf32> to vector<8x256xf32>
    %84 = arith.addf %80, %83 : vector<8x256xf32>
    %85 = arith.addf %3, %84 : vector<8x256xf32>
    %86 = vector.extract_strided_slice %52 {offsets = [0, 0], sizes = [2, 256], strides = [1, 1]} : vector<8x256xf32> to vector<2x256xf32>
    %c0_45 = arith.constant 0 : index
    %c0_46 = arith.constant 0 : index
    %c0_47 = arith.constant 0 : index
    %c0_48 = arith.constant 0 : index
    %87 = vector.load %arg5[%c0_45, %c0_46, %c0_47, %c0_48] : memref<1x2x2x256xf32, #tpu.memory_space<vmem>>, vector<1x1x2x256xf32>
    %88 = vector.shape_cast %87 : vector<1x1x2x256xf32> to vector<2x256xf32>
    %89 = vector.shape_cast %86 : vector<2x256xf32> to vector<1x1x2x256xf32>
    tpu.vector_store %arg5[%c0_45, %c0_46, %c0_47, %c0_48], %89 {strides = array<i32>} : memref<1x2x2x256xf32, #tpu.memory_space<vmem>>, vector<1x1x2x256xf32>,
    %90 = vector.extract_strided_slice %85 {offsets = [0, 0], sizes = [2, 256], strides = [1, 1]} : vector<8x256xf32> to vector<2x256xf32>
    %c0_49 = arith.constant 0 : index
    %c1_50 = arith.constant 1 : index
    %c0_51 = arith.constant 0 : index
    %c0_52 = arith.constant 0 : index
    %91 = vector.load %arg5[%c0_49, %c1_50, %c0_51, %c0_52] : memref<1x2x2x256xf32, #tpu.memory_space<vmem>>, vector<1x1x2x256xf32>
    %92 = vector.shape_cast %91 : vector<1x1x2x256xf32> to vector<2x256xf32>
    %93 = vector.shape_cast %90 : vector<2x256xf32> to vector<1x1x2x256xf32>
    tpu.vector_store %arg5[%c0_49, %c1_50, %c0_51, %c0_52], %93 {strides = array<i32>} : memref<1x2x2x256xf32, #tpu.memory_space<vmem>>, vector<1x1x2x256xf32>,
    return
  }
  func.func @transform_0(%arg0: i32) -> (i32, i32, i32, i32) {
    %c0_i32 = arith.constant 0 : i32
    %c0_i32_0 = arith.constant 0 : i32
    %c0_i32_1 = arith.constant 0 : i32
    %c0_i32_2 = arith.constant 0 : i32
    return %arg0, %c0_i32, %c0_i32_0, %c0_i32_1 : i32, i32, i32, i32
  }
  func.func @transform_1(%arg0: i32) -> (i32, i32, i32) {
    %c0_i32 = arith.constant 0 : i32
    %c0_i32_0 = arith.constant 0 : i32
    %c0_i32_1 = arith.constant 0 : i32
    %c0_i32_2 = arith.constant 0 : i32
    return %c0_i32, %c0_i32_0, %c0_i32_1 : i32, i32, i32
  }
  func.func @transform_2(%arg0: i32) -> (i32, i32, i32) {
    %c0_i32 = arith.constant 0 : i32
    %c0_i32_0 = arith.constant 0 : i32
    %c0_i32_1 = arith.constant 0 : i32
    %c0_i32_2 = arith.constant 0 : i32
    return %c0_i32, %c0_i32_0, %c0_i32_1 : i32, i32, i32
  }
  func.func @transform_3(%arg0: i32) -> (i32, i32, i32) {
    %c0_i32 = arith.constant 0 : i32
    %c0_i32_0 = arith.constant 0 : i32
    %c0_i32_1 = arith.constant 0 : i32
    %c0_i32_2 = arith.constant 0 : i32
    return %c0_i32, %c0_i32_0, %c0_i32_1 : i32, i32, i32
  }
  func.func @transform_4(%arg0: i32) -> (i32, i32, i32, i32) {
    %c0_i32 = arith.constant 0 : i32
    %c0_i32_0 = arith.constant 0 : i32
    %c0_i32_1 = arith.constant 0 : i32
    %c0_i32_2 = arith.constant 0 : i32
    return %arg0, %c0_i32, %c0_i32_0, %c0_i32_1 : i32, i32, i32, i32
  }
}

</mosaic_0001>

<bundles_post_ra>
// kernel: tpu_custom_call.1
= control target key start
LH: loop header
LB: loop body
LE: loop exit
PB: predicated region body
PF: predicated region fallthrough
CT: control target
= control target key end

     0   :  { %9 = vsyncpa [#allocation3], 0  ;;  %s1564_s0 = inlined_call_operand.hbm [shape: f32[2,2,8,256], index: 0, kind: input, shape index: {}]   ;;  %s1565_s1 = inlined_call_operand.hbm [shape: f32[2,8,72], index: 1, kind: input, shape index: {}]   ;;  %s1566_s2 = inlined_call_operand.vmem [shape: f32[2,8,1], index: 2, kind: input, shape index: {}]   ;;  %s1567_s3 = inlined_call_operand.vmem [shape: f32[9,1,256], index: 3, kind: input, shape index: {}]   ;;  %s1568_s4 = inlined_call_operand.hbm [shape: f32[2,2,2,256], index: 4, kind: output, shape index: {}]  }
   0x1   :  { %11 = vsyncpa [#allocation3 + $0x1], 0 }
   0x2   :  { %12 = vsyncpa [#allocation6], 0 }
   0x3   :  { %13 = vsyncpa [#allocation4], 0 }
   0x4   :  { %15 = vsyncpa [#allocation4 + $0x1], 0  ;;  %s1081_s15 = smov 0   ;;  %s1083_s16 = smov 0  }
   0x5   :  { %s1085_s17 = smov 0   ;;  %s1087_s18 = smov 0  }
   0x6 LB: > { %s1102_s19 = sadd.s32 4294967295, %s1035_s18   ;;  %s768_s20 = sadd.s32 4294967294, %s1035_s18   ;;  %s1035_s18 = sphi %s1087_s18, %s1588_s18   ;;  %s1031_s17 = sphi %s1085_s17, %s1587_s17   ;;  %s1027_s16 = sphi %s1083_s16, %s1586_s16   ;;  %s1023_s15 = sphi %s1081_s15, %s1585_s15  }
   0x7   : > { %p41_p0 = scmp.ne.s32.totalorder %s1027_s16, %s1023_s15  ;;  %p1569_p1 = scmp.eq.s32.totalorder %s1102_s19, 0 }
   0x8   : > { %p134_p3 = scmp.eq.s32.totalorder %s768_s20, 1  ;;  %p769_p5 = scmp.ge.s32.totalorder %s1035_s18, 1 }
   0x9   : > { %p1111_p4 = por %p1569_p1, %p41_p0  ;;  %p141_p7 = scmp.lt.s32.totalorder %s1035_s18, 3 }
   0xa   : > { %p1116_p6 = por %p134_p3, %p41_p0  ;;  %s1037_s24 = smov [#allocation5]  }
   0xb   : > { %s1572_s21 = scalar_select %p1111_p4, 1, 0 }
   0xc   : > { %s1573_s22 = scalar_select %p1116_p6, 1, 0 }
   0xd   : > { %p1121_p8 = pnand %p769_p5, %p141_p7  ;;  %s153_s25 = sshll.u32 %s1037_s24, 4  ;;  %s1125_s25 = int_to_ptr.vmem [resolvable:$true] %s153_s25 }
   0xe   : > { %s1137_s27 = sadd.s32 1, %s1035_s18   ;;  %s28_s28 = sadd.s32 1, %s1031_s17 }
   0xf   : > { %s1574_s23 = scalar_select %p1121_p8, 1, 0 }
  0x10   : > { %p841_p9 = pneg %p1121_p8  ;;  %s25_s29 = ssub.s32 %s1035_s18, %s1137_s27 }
  0x11   : > { %s907_s6 = scalar_lea.hbm %s1565_s1, 256 }
  0x12   : > { %p1132_p11 = pnand %p841_p9, %p1569_p1  ;;  %p908_p12 = scmp.ne.s32.totalorder %s1565_s1, %s907_s6 }
  0x13   : > { %p914_p5 = scmp.lt.u32.totalorder %s907_s6, %s1565_s1 }
  0x14   : > { %p909_p13 = pneg %p1132_p11 }
  0x16   : > { %p910_p0 = pnand %p909_p13, %p908_p12 }
  0x18   : > { %p911_p3 = pneg %p910_p0 }
  0x1a   : > { %p916_p7 = pnand %p914_p5, %p911_p3 }
  0x1c   : > { %919 = shalt.err (!%p916_p7)
}
  0x1d   : > { %s920_s11 = scalar_lea.vmem %s1125_s25, 256  ;;  %p928_p2 = scmp.lt.s32.totalorder %s1125_s25, %s1125_s25 }
  0x1e   : > { %p921_p9 = scmp.ne.s32.totalorder %s1125_s25, %s920_s11  ;;  %p929_p6 = scmp.lt.s32.totalorder %s920_s11, %s920_s11 }
  0x20   : > { %p923_p10 = pnand %p921_p9, %p909_p13  ;;  %p930_p4 = por %p929_p6, %p928_p2 }
  0x22   : > { %p924_p1 = pneg %p923_p10 }
  0x24   : > { %p931_p8 = pnand %p930_p4, %p924_p1 }
  0x26   : > { %934 = shalt.err (!%p931_p8)
}
  0x27   : > { %s1038_s12 = smov 128   ;;  %s1039_s13 = smov 8  }
  0x28   : > { %844 = dma.hbm_to_vmem [thread:$0]  (!%p1132_p11), %s1565_s1, 256, %s1125_s25, [#allocation6], %s1038_s12, %s1038_s12, %s1039_s13  }
  0x29   : > { %p26_p2 = scmp.eq.s32.totalorder %s25_s29, 0  ;;  %p35_p1 = scmp.ne.s32.totalorder %s1031_s17, %s1027_s16 }
  0x2a   : > { %p36_p4 = scmp.eq.s32.totalorder %s1035_s18, 0  ;;  %p854_p6 = scmp.lt.s32.totalorder %s1035_s18, 2 }
  0x2b   : > { %s1168_s24 = scalar_select %p26_p2, %s1031_s17, %s28_s28  }
  0x2c   : > { %p37_p8 = por %p36_p4, %p35_p1  ;;  %p1576_p10 = scmp.eq.s32.totalorder %s1102_s19, 1 }
  0x2d   : > { %s173_s5 = sand.u32 1, %s1031_s17   ;;  %s798_s6 = sshll.u32 %s1035_s18, 9 }
  0x2e   : > { %p1172_p12 = por %p1576_p10, %p35_p1  ;;  %s772_s7 = sshll.u32 %s173_s5, 5 }
  0x2f   : > { %s1181_s9 = scalar_lea.hbm %s1564_s0, %s798_s6  ;;  %s177_s25 = scalar_lea.vmem [#allocation2], %s772_s7 }
  0x30   : > { %s184_s28 = sshll.u32 %s177_s25, 4  ;;  %p1183_p11 = pnand %p854_p6, %p37_p8  ;;  %s1187_s28 = int_to_ptr.vmem [resolvable:$true] %s184_s28 }
  0x31   : > { %s1189_s10 = scalar_lea.sflag [#allocation3], %s173_s5  ;;  %s935_s11 = scalar_lea.hbm %s1181_s9, 512 }
  0x32   : > { %p936_p13 = scmp.ne.s32.totalorder %s1181_s9, %s935_s11  ;;  %p937_p0 = pneg %p1183_p11 }
  0x33   : > { %s940_s14 = scalar_lea.hbm %s1564_s0, 1024  ;;  %p941_p7 = scmp.lt.u32.totalorder %s1181_s9, %s1564_s0 }
  0x34   : > { %p938_p3 = pnand %p937_p0, %p936_p13  ;;  %p942_p9 = scmp.lt.u32.totalorder %s940_s14, %s935_s11 }
  0x35   : > { %p944_p1 = scmp.lt.u32.totalorder %s935_s11, %s1181_s9 }
  0x36   : > { %p939_p5 = pneg %p938_p3  ;;  %p943_p2 = por %p942_p9, %p941_p7 }
  0x38   : > { %p945_p4 = por %p944_p1, %p943_p2 }
  0x3a   : > { %p946_p6 = pnand %p945_p4, %p939_p5 }
  0x3c   : > { %949 = shalt.err (!%p946_p6)
}
  0x3d   : > { %s950_s5 = scalar_lea.vmem %s1187_s28, 512  ;;  %s1040_s7 = smov [#allocation2]  }
  0x3e   : > { %p951_p8 = scmp.ne.s32.totalorder %s1187_s28, %s950_s5  ;;  %s955_s26 = sshll.u32 %s1040_s7, 4  ;;  %s956_s26 = int_to_ptr.vmem [resolvable:$false] %s955_s26 }
  0x3f   : > { %s957_s8 = scalar_lea.vmem %s956_s26, 1024  ;;  %p958_p3 = scmp.lt.s32.totalorder %s1187_s28, %s956_s26 }
  0x40   : > { %p953_p10 = pnand %p951_p8, %p937_p0  ;;  %p959_p7 = scmp.lt.s32.totalorder %s957_s8, %s950_s5 }
  0x42   : > { %p954_p13 = pneg %p953_p10  ;;  %p960_p9 = por %p959_p7, %p958_p3 }
  0x44   : > { %p961_p2 = pnand %p960_p9, %p954_p13 }
  0x46   : > { %964 = shalt.err (!%p961_p2)
}
  0x47   : > { %s1041_s25 = smov 256   ;;  %s1042_s11 = smov 16  }
  0x48   : > { %848 = dma.hbm_to_vmem [thread:$0]  (!%p1183_p11), %s1181_s9, 512, %s1187_s28, %s1189_s10, %s1041_s25, %s1041_s25, %s1042_s11  }
  0x49   : > { %p1579_p0 = scmp.ne.s32.totalorder %s1574_s23, 0 }
  0x4a   : > { %s1220_s12 = sand.u32 (!%p1579_p0), 1, %s1027_s16   ;;  %p1580_p5 = scmp.ne.s32.totalorder (!%p1579_p0), %s1572_s21, 0 }
  0x4b   : > { %196 = sbr.rel (%p1579_p0) target bundleno = 841 (0x349), region = 36  ;;  %s776_s13 = sshll.u32 (!%p1579_p0), %s1220_s12, 5 }
  0x4c   : > { %s199_s14 = scalar_lea.sflag (!%p1579_p0), [#allocation3], %s1220_s12  ;;  %s1224_s20 = scalar_lea.vmem (!%p1579_p0), [#allocation2], %s776_s13 }
  0x52   : > { %1010 = dma.done.wait (%p1580_p5), %s199_s14, 512  }
  0x53   : > { %1012 = vsyncadd (%p1580_p5), %s199_s14, 4294966784  ;;  %p1581_p11 = scmp.eq.s32.totalorder %s1102_s19, 0 }
  0x55   : > { %1014 = dma.done.wait (%p1581_p11), [#allocation6], 256   ;;  %p1582_p1 = pmov %p1581_p11 }
  0x56   : > { %v1235_v0 = vld [vmem:[%s1224_s20 + $0x10] sm:$0xff]  ;;  %s1043_s23 = smov 16   ;;  %s1044_s9 = smov 17   ;;  %v1242_v1 = vld [vmem:[%s1224_s20 + $0x18] sm:$0xff]  ;;  %v1049_v2 = vmov 0.0   ;;  %v1050_v3 = vmov 0   ;;  %v255_v5 = vlaneseq }
  0x57   : > { %1016 = vsyncadd (%p1582_p1), [#allocation6], 4294967040  ;;  %273 = vrot.lane.b32.xlu1 %v1235_v0, %s1043_s23  ;;  %251 = vrot.lane.b32.xlu0 %v1235_v0, %s1044_s9  ;;  %s1045_s21 = smov 15   ;;  %s1046_s28 = smov 1   ;;  %v414_v4 = vld [vmem:[%s1566_s2] sm:$0xff]  ;;  %vm420_vm8 = vcmask 588800  }
  0x58   : > { %s1047_s29 = smov 127   ;;  %s1048_s10 = smov 113   ;;  %488 = vmatprep.mubr.f32.mxu0 %v1049_v2  ;;  %637 = vmatprep.mubr.f32.mxu1 %v1049_v2  ;;  %v262_v6 = vshrl.u32 %v255_v5, 7  ;;  %v1275_v7 = vand.u32 127, %v255_v5  ;;  %v781_v10 = vld [vmem:[%s1567_s3 + $0x2] sm:$0x3] }
  0x59   : > { %906 = vset.pattern.permute.xlu0 %v1050_v3  ;;  %s1051_s6 = smov 112   ;;  %s1052_s5 = smov 111   ;;  %v236_v11 = vld [vmem:[%s1567_s3] sm:$0x3]  ;;  %v782_v28 = vld [vmem:[%s1567_s3 + $0x4] sm:$0x3] }
  0x5a   : > { %v1277_v8 = vsub.s32 0, %v262_v6  ;;  %v1279_v9 = vsub.s32 1, %v262_v6  ;;  %vm277_vm0 = vcmp.lt.s32.totalorder %v1275_v7, 16  ;;  %vm257_vm1 = vcmp.lt.s32.totalorder %v1275_v7, 17  ;;  %v783_v29 = vld [vmem:[%s1567_s3 + $0x6] sm:$0x3] }
  0x5b   : > { %275 = vrot.lane.b32.xlu1 %v1242_v1, %s1043_s23  ;;  %253 = vrot.lane.b32.xlu0 %v1242_v1, %s1044_s9  ;;  %vm297_vm2 = vcmp.lt.s32.totalorder %v1275_v7, 15  ;;  %vm317_vm3 = vcmp.lt.s32.totalorder %v1275_v7, 1  ;;  %v784_v38 = vld [vmem:[%s1567_s3 + $0xa] sm:$0x3]  ;;  %vm337_vm4 = vcmp.lt.s32.totalorder %v1275_v7, 127  ;;  %vm357_vm5 = vcmp.lt.s32.totalorder %v1275_v7, 113 }
  0x5c   : > { %v1290_v14 = vrot.slane %v781_v10, %v1277_v8  ;;  %v1293_v15 = vrot.slane %v236_v11, %v1277_v8  ;;  %v1296_v16 = vrot.slane %v236_v11, %v1279_v9  ;;  %v1299_v17 = vrot.slane %v781_v10, %v1279_v9  ;;  %v785_v59 = vld [vmem:[%s1567_s3 + $0xc] sm:$0x3]  ;;  %v786_v60 = vld [vmem:[%s1567_s3 + $0xe] sm:$0x3]  ;;  %v787_v10 = vld [vmem:[%s1567_s3 + $0x10] sm:$0x3] }
  0x5d   : > { %v1322_v34 = vrot.slane %v782_v28, %v1277_v8  ;;  %v1325_v35 = vrot.slane %v782_v28, %v1279_v9  ;;  %v1328_v36 = vrot.slane %v783_v29, %v1277_v8  ;;  %v1331_v37 = vrot.slane %v783_v29, %v1279_v9  ;;  %s778_s11 = sshll.u32 %s1220_s12, 3 }
  0x5e   : > { %v1346_v45 = vrot.slane %v784_v38, %v1277_v8  ;;  %v1349_v46 = vrot.slane %v784_v38, %v1279_v9  ;;  %v1371_v3 = vrot.slane %v785_v59, %v1277_v8  ;;  %vm377_vm6 = vcmp.lt.s32.totalorder %v1275_v7, 112  ;;  %s1425_s13 = scalar_lea.vmem [#allocation7], %s778_s11 }
  0x5f   : > { %295 = vrot.lane.b32.xlu1 %v1242_v1, %s1045_s21  ;;  %293 = vrot.lane.b32.xlu0 %v1235_v0, %s1045_s21  ;;  %v1378_v5 = vrot.slane %v786_v60, %v1277_v8  ;;  %v1381_v6 = vrot.slane %v786_v60, %v1279_v9  ;;  %vm397_vm7 = vcmp.lt.s32.totalorder %v1275_v7, 111 }
  0x63   : > { %315 = vrot.lane.b32.xlu1 %v1242_v1, %s1046_s28  ;;  %313 = vrot.lane.b32.xlu0 %v1235_v0, %s1046_s28 }
  0x67   : > { %335 = vrot.lane.b32.xlu1 %v1242_v1, %s1047_s29  ;;  %333 = vrot.lane.b32.xlu0 %v1235_v0, %s1047_s29 }
  0x6b   : > { %355 = vrot.lane.b32.xlu1 %v1242_v1, %s1048_s10  ;;  %353 = vrot.lane.b32.xlu0 %v1235_v0, %s1048_s10 }
  0x6f   : > { %375 = vrot.lane.b32.xlu1 %v1242_v1, %s1051_s6  ;;  %373 = vrot.lane.b32.xlu0 %v1235_v0, %s1051_s6 }
  0x73   : > { %395 = vrot.lane.b32.xlu1 %v1242_v1, %s1052_s5  ;;  %393 = vrot.lane.b32.xlu0 %v1235_v0, %s1052_s5 }
  0x77   : > { %417 = vperm.xlu0 %906, %v414_v4   ;;  %v1374_v4 = vrot.slane %v785_v59, %v1279_v9 }
  0xc9   : > { %v274_v12 = vpop.permute.xlu1 %273  ;;  %v252_v13 = vpop.permute.xlu0 %251 }
  0xcd   : > { %v276_v18 = vpop.permute.xlu1 %275  ;;  %v254_v19 = vpop.permute.xlu0 %253 }
  0xce   : > { %v278_v20 = vsel %vm277_vm0, %v274_v12, %v276_v18  ;;  %v279_v21 = vsel %vm277_vm0, %v276_v18, %v274_v12  ;;  %v258_v22 = vsel %vm257_vm1, %v252_v13, %v254_v19  ;;  %v259_v23 = vsel %vm257_vm1, %v254_v19, %v252_v13 }
  0xcf   : > { %v291_v24 = vmul.f32 %v1290_v14, %v279_v21  ;;  %v271_v25 = vmul.f32 %v1293_v15, %v259_v23  ;;  %v272_v26 = vmul.f32 %v1296_v16, %v258_v22  ;;  %v292_v27 = vmul.f32 %v1299_v17, %v278_v20 }
  0xd0   : > { %v1396_v21 = vrot.slane %v787_v10, %v1279_v9 }
  0xd1   : > { %v296_v30 = vpop.permute.xlu1 %295  ;;  %v294_v31 = vpop.permute.xlu0 %293  ;;  %v801_v32 = vpack.c.bf16 %v292_v27, %v272_v26  ;;  %v803_v33 = vpack.c.bf16 %v291_v24, %v271_v25  ;;  %v1403_v26 = vrot.slane %v787_v10, %v1277_v8  ;;  %v413_v8 = vld [vmem:[#allocation5] sm:$0xff] }
  0xd2   : > { %v298_v39 = vsel %vm297_vm2, %v294_v31, %v296_v30  ;;  %v299_v40 = vsel %vm297_vm2, %v296_v30, %v294_v31 }
  0xd3   : > { %802 = vmatprep.subr.bf16.mxu0 %v801_v32  ;;  %v311_v47 = vmul.f32 %v1322_v34, %v299_v40  ;;  %v312_v48 = vmul.f32 %v1325_v35, %v298_v39  ;;  %v231_v40 = vld [vmem:[%s1224_s20] sm:$0xff] }
  0xd4   : > { %804 = vmatpush1.bf16.msra.mxu0 %v803_v33 }
  0xd5   : > { %v316_v41 = vpop.permute.xlu1 %315  ;;  %v314_v42 = vpop.permute.xlu0 %313 }
  0xd6   : > { %v318_v43 = vsel %vm317_vm3, %v314_v42, %v316_v41  ;;  %v319_v44 = vsel %vm317_vm3, %v316_v41, %v314_v42  ;;  %v232_v42 = vld [vmem:[%s1224_s20 + $0x8] sm:$0xff] }
  0xd7   : > { %v331_v49 = vmul.f32 %v1328_v36, %v319_v44  ;;  %v332_v50 = vmul.f32 %v1331_v37, %v318_v43 }
  0xd9   : > { %v336_v51 = vpop.permute.xlu1 %335  ;;  %v334_v52 = vpop.permute.xlu0 %333  ;;  %v805_v53 = vpack.c.bf16 %v332_v50, %v312_v48  ;;  %v807_v54 = vpack.c.bf16 %v331_v49, %v311_v47  ;;  %v789_v50 = vld [vmem:[%s1566_s2 + $0x8] sm:$0xff] }
  0xda   : > { %v338_v55 = vsel %vm337_vm4, %v334_v52, %v336_v51  ;;  %v339_v56 = vsel %vm337_vm4, %v336_v51, %v334_v52 }
  0xdb   : > { %v351_v57 = vmul.f32 %v1346_v45, %v338_v55  ;;  %v352_v58 = vmul.f32 %v1349_v46, %v339_v56  ;;  %806 = vmatprep.subr.bf16.mxu0 %v805_v53 }
  0xdc   : > { %808 = vmatpush1.bf16.msra.mxu0 %v807_v54 }
  0xdd   : > { %v356_v61 = vpop.permute.xlu1 %355  ;;  %v354_v62 = vpop.permute.xlu0 %353  ;;  %v809_v63 = vpack.c.bf16 %v352_v58, %v1242_v1  ;;  %v811_v2 = vpack.c.bf16 %v351_v57, %v1235_v0 }
  0xde   : > { %v358_v11 = vsel %vm357_vm5, %v354_v62, %v356_v61  ;;  %v359_v12 = vsel %vm357_vm5, %v356_v61, %v354_v62 }
  0xdf   : > { %810 = vmatprep.subr.bf16.mxu0 %v809_v63  ;;  %v371_v22 = vmul.f32 %v1371_v3, %v358_v11  ;;  %v372_v23 = vmul.f32 %v1374_v4, %v359_v12 }
  0xe0   : > { %812 = vmatpush1.bf16.msra.mxu0 %v811_v2 }
  0xe1   : > { %v376_v13 = vpop.permute.xlu1 %375  ;;  %v374_v18 = vpop.permute.xlu0 %373 }
  0xe2   : > { %v378_v19 = vsel %vm377_vm6, %v374_v18, %v376_v13  ;;  %v379_v20 = vsel %vm377_vm6, %v376_v13, %v374_v18 }
  0xe3   : > { %v391_v24 = vmul.f32 %v1378_v5, %v378_v19  ;;  %v392_v25 = vmul.f32 %v1381_v6, %v379_v20 }
  0xe5   : > { %v396_v27 = vpop.permute.xlu1 %395  ;;  %v813_v28 = vpack.c.bf16 %v392_v25, %v372_v23  ;;  %v394_v29 = vpop.permute.xlu0 %393  ;;  %v815_v30 = vpack.c.bf16 %v391_v24, %v371_v22 }
  0xe6   : > { %v398_v9 = vsel %vm397_vm7, %v394_v29, %v396_v27  ;;  %v399_v31 = vsel %vm397_vm7, %v396_v27, %v394_v29 }
  0xe7   : > { %814 = vmatprep.subr.bf16.mxu0 %v813_v28  ;;  %v412_v32 = vmul.f32 %v1396_v21, %v399_v31  ;;  %v411_v33 = vmul.f32 %v1403_v26, %v398_v9 }
  0xe8   : > { %816 = vmatpush1.bf16.msra.mxu0 %v815_v30 }
  0xe9   : > { %440 = vmatprep.subr.mxu0 %v412_v32 }
  0xec   : > { %441 = vmatpush1.msra.mxu0 %v411_v33 }
  0xed   : > { %788 = vmatmul.mubr.msk.f32.vlgmr.msra.gmra.mrb[0].mxu0 %vm420_vm8, %v413_v8 }
  0xf6   : > { %v418_v38 = vpop.permute.xlu0 %417 }
 0x1c0   : > { %v490_v39 = vpop.f32.mrb[0].mxu0 }
 0x1c1   : > { %v491_v41 = vadd.f32 %v490_v39, %v418_v38  ;;  %v492_v43 = vpop.f32.mrb[1].mxu0 }
 0x1c2   : > { %v493_v44 = vadd.f32 %v492_v43, %v418_v38 }
 0x1c3   : > { %v1415_v47 = vadd.f32 %v491_v41, %v231_v40 }
 0x1c4   : > { %v1417_v48 = vadd.f32 %v493_v44, %v232_v42 }
 0x1c5   : > { %505 = vrot.lane.b32.xlu0 %v1415_v47, %s1043_s23  ;;  %497 = vrot.lane.b32.xlu1 %v1415_v47, %s1044_s9 }
 0x1c6   : > { %v648_v49 = vcombine.low %v1415_v47, %v1417_v48 }
 0x1c8   : > { %791 = vst.sshfl [vmem:[%s1425_s13] sm:$0x33 pattern:$0x76325410] %v648_v49 }
 0x1c9   : > { %513 = vrot.lane.b32.xlu0 %v1415_v47, %s1045_s21  ;;  %499 = vrot.lane.b32.xlu1 %v1417_v48, %s1044_s9  ;;  %s685_s9 = sshll.u32 %s1425_s13, 4  ;;  %s1514_s9 = int_to_ptr.vmem [resolvable:$true] %s685_s9 }
 0x1cd   : > { %521 = vrot.lane.b32.xlu0 %v1415_v47, %s1046_s28  ;;  %507 = vrot.lane.b32.xlu1 %v1417_v48, %s1043_s23 }
 0x1d1   : > { %529 = vrot.lane.b32.xlu0 %v1415_v47, %s1047_s29  ;;  %515 = vrot.lane.b32.xlu1 %v1417_v48, %s1045_s21  ;;  %s800_s21 = sshll.u32 %s1102_s19, 7  ;;  %s1053_s19 = smov [#allocation7]  }
 0x1d2   : > { %s969_s14 = sshll.u32 %s1053_s19, 4  ;;  %s970_s14 = int_to_ptr.vmem [resolvable:$false] %s969_s14 }
 0x1d3   : > { %s971_s7 = scalar_lea.vmem %s970_s14, 256  ;;  %p972_p10 = scmp.lt.s32.totalorder %s1514_s9, %s970_s14 }
 0x1d5   : > { %537 = vrot.lane.b32.xlu0 %v1415_v47, %s1048_s10  ;;  %523 = vrot.lane.b32.xlu1 %v1417_v48, %s1046_s28 }
 0x1d9   : > { %545 = vrot.lane.b32.xlu0 %v1415_v47, %s1051_s6  ;;  %531 = vrot.lane.b32.xlu1 %v1417_v48, %s1047_s29 }
 0x1dd   : > { %553 = vrot.lane.b32.xlu0 %v1415_v47, %s1052_s5  ;;  %539 = vrot.lane.b32.xlu1 %v1417_v48, %s1048_s10  ;;  %s1519_s10 = scalar_lea.hbm %s1568_s4, %s800_s21 }
 0x1e1   : > { %567 = vperm.xlu0 %906, %v789_v50   ;;  %547 = vrot.lane.b32.xlu1 %v1417_v48, %s1051_s6  ;;  %s672_s6 = scalar_lea.sflag [#allocation4], %s1220_s12 }
 0x1e5   : > { %555 = vrot.lane.b32.xlu1 %v1417_v48, %s1052_s5  ;;  %s965_s5 = scalar_lea.vmem %s1514_s9, 128 }
 0x1e6   : > { %p966_p4 = scmp.ne.s32.totalorder %s1514_s9, %s965_s5  ;;  %p973_p13 = scmp.lt.s32.totalorder %s971_s7, %s965_s5 }
 0x1e8   : > { %p967_p6 = pnand %p966_p4, %p1172_p12  ;;  %p974_p3 = por %p973_p13, %p972_p10 }
 0x1ea   : > { %p968_p8 = pneg %p967_p6 }
 0x1ec   : > { %p975_p7 = pnand %p974_p3, %p968_p8 }
 0x237   : > { %v506_v51 = vpop.permute.xlu0 %505  ;;  %v498_v52 = vpop.permute.xlu1 %497 }
 0x23b   : > { %v514_v53 = vpop.permute.xlu0 %513  ;;  %v500_v54 = vpop.permute.xlu1 %499 }
 0x23c   : > { %v501_v55 = vsel %vm257_vm1, %v498_v52, %v500_v54  ;;  %v502_v56 = vsel %vm257_vm1, %v500_v54, %v498_v52 }
 0x23d   : > { %v503_v61 = vmul.f32 %v502_v56, %v1293_v15  ;;  %v504_v63 = vmul.f32 %v501_v55, %v1296_v16 }
 0x23f   : > { %v522_v57 = vpop.permute.xlu0 %521  ;;  %v508_v58 = vpop.permute.xlu1 %507 }
 0x240   : > { %v509_v59 = vsel %vm277_vm0, %v506_v51, %v508_v58  ;;  %v510_v60 = vsel %vm277_vm0, %v508_v58, %v506_v51 }
 0x241   : > { %v511_v62 = vmul.f32 %v510_v60, %v1290_v14  ;;  %v512_v2 = vmul.f32 %v509_v59, %v1299_v17 }
 0x243   : > { %v516_v10 = vpop.permute.xlu1 %515  ;;  %v817_v11 = vpack.c.bf16 %v512_v2, %v504_v63  ;;  %v819_v12 = vpack.c.bf16 %v511_v62, %v503_v61  ;;  %v530_v13 = vpop.permute.xlu0 %529 }
 0x244   : > { %v517_v18 = vsel %vm297_vm2, %v514_v53, %v516_v10  ;;  %v518_v19 = vsel %vm297_vm2, %v516_v10, %v514_v53 }
 0x245   : > { %818 = vmatprep.subr.bf16.mxu1 %v817_v11  ;;  %v519_v16 = vmul.f32 %v518_v19, %v1322_v34  ;;  %v520_v17 = vmul.f32 %v517_v18, %v1325_v35 }
 0x246   : > { %820 = vmatpush1.bf16.msra.mxu1 %v819_v12 }
 0x247   : > { %v524_v20 = vpop.permute.xlu1 %523  ;;  %v538_v24 = vpop.permute.xlu0 %537 }
 0x248   : > { %v525_v14 = vsel %vm317_vm3, %v522_v57, %v524_v20  ;;  %v526_v15 = vsel %vm317_vm3, %v524_v20, %v522_v57 }
 0x249   : > { %v527_v22 = vmul.f32 %v526_v15, %v1328_v36  ;;  %v528_v23 = vmul.f32 %v525_v14, %v1331_v37 }
 0x24b   : > { %v532_v25 = vpop.permute.xlu1 %531  ;;  %v821_v27 = vpack.c.bf16 %v528_v23, %v520_v17  ;;  %v823_v28 = vpack.c.bf16 %v527_v22, %v519_v16  ;;  %v546_v31 = vpop.permute.xlu0 %545 }
 0x24c   : > { %v533_v29 = vsel %vm337_vm4, %v530_v13, %v532_v25  ;;  %v534_v30 = vsel %vm337_vm4, %v532_v25, %v530_v13 }
 0x24d   : > { %v535_v9 = vmul.f32 %v533_v29, %v1346_v45  ;;  %v536_v34 = vmul.f32 %v534_v30, %v1349_v46  ;;  %822 = vmatprep.subr.bf16.mxu1 %v821_v27 }
 0x24e   : > { %824 = vmatpush1.bf16.msra.mxu1 %v823_v28 }
 0x24f   : > { %v540_v35 = vpop.permute.xlu1 %539  ;;  %v825_v36 = vpack.c.bf16 %v536_v34, %v1417_v48  ;;  %v827_v37 = vpack.c.bf16 %v535_v9, %v1415_v47  ;;  %v554_v42 = vpop.permute.xlu0 %553 }
 0x250   : > { %v541_v32 = vsel %vm357_vm5, %v538_v24, %v540_v35  ;;  %v542_v33 = vsel %vm357_vm5, %v540_v35, %v538_v24 }
 0x251   : > { %826 = vmatprep.subr.bf16.mxu1 %v825_v36  ;;  %v543_v38 = vmul.f32 %v541_v32, %v1371_v3  ;;  %v544_v39 = vmul.f32 %v542_v33, %v1374_v4 }
 0x252   : > { %828 = vmatpush1.bf16.msra.mxu1 %v827_v37 }
 0x253   : > { %v548_v8 = vpop.permute.xlu1 %547 }
 0x254   : > { %v549_v45 = vsel %vm377_vm6, %v546_v31, %v548_v8  ;;  %v550_v46 = vsel %vm377_vm6, %v548_v8, %v546_v31 }
 0x255   : > { %v551_v40 = vmul.f32 %v549_v45, %v1378_v5  ;;  %v552_v41 = vmul.f32 %v550_v46, %v1381_v6  ;;  %v562_v5 = vld [vmem:[#allocation5 + $0x8] sm:$0xff] }
 0x257   : > { %v556_v43 = vpop.permute.xlu1 %555  ;;  %v829_v44 = vpack.c.bf16 %v552_v41, %v544_v39  ;;  %v831_v47 = vpack.c.bf16 %v551_v40, %v543_v38 }
 0x258   : > { %v558_v48 = vsel %vm397_vm7, %v556_v43, %v554_v42  ;;  %v557_v49 = vsel %vm397_vm7, %v554_v42, %v556_v43 }
 0x259   : > { %v560_v3 = vmul.f32 %v558_v48, %v1396_v21  ;;  %830 = vmatprep.subr.bf16.mxu1 %v829_v44  ;;  %v559_v4 = vmul.f32 %v557_v49, %v1403_v26 }
 0x25a   : > { %832 = vmatpush1.bf16.msra.mxu1 %v831_v47 }
 0x25b   : > { %589 = vmatprep.subr.mxu1 %v560_v3 }
 0x25e   : > { %590 = vmatpush1.msra.mxu1 %v559_v4 }
 0x25f   : > { %790 = vmatmul.mubr.msk.f32.vlgmr.msra.gmra.mrb[0].mxu1 %vm420_vm8, %v562_v5 }
 0x260   : > { %v568_v6 = vpop.permute.xlu0 %567 }
 0x332   : > { %v639_v50 = vpop.f32.mrb[0].mxu1 }
 0x333   : > { %v640_v51 = vadd.f32 %v639_v50, %v568_v6  ;;  %v641_v7 = vpop.f32.mrb[1].mxu1 }
 0x334   : > { %v642_v52 = vadd.f32 %v641_v7, %v568_v6 }
 0x335   : > { %v644_v21 = vadd.f32 %v1235_v0, %v640_v51 }
 0x336   : > { %v645_v53 = vadd.f32 %v1242_v1, %v642_v52 }
 0x338   : > { %v660_v26 = vcombine.low %v644_v21, %v645_v53 }
 0x33a   : > { %799 = vst.sshfl [vmem:[%s1425_s13 + $0x4] sm:$0x33 pattern:$0x76325410] %v660_v26 }
 0x33b   : > { %978 = shalt.err (!%p975_p7)
}
 0x33c   : > { %s979_s26 = scalar_lea.hbm %s1519_s10, 128  ;;  %s983_s11 = scalar_lea.hbm %s1568_s4, 256 }
 0x33d   : > { %p980_p9 = scmp.ne.s32.totalorder %s1519_s10, %s979_s26  ;;  %p984_p5 = scmp.lt.u32.totalorder %s1519_s10, %s1568_s4 }
 0x33e   : > { %p985_p11 = scmp.lt.u32.totalorder %s983_s11, %s979_s26  ;;  %p987_p4 = scmp.lt.u32.totalorder %s979_s26, %s1519_s10 }
 0x33f   : > { %p981_p2 = pnand %p980_p9, %p1172_p12 }
 0x340   : > { %p986_p1 = por %p985_p11, %p984_p5 }
 0x341   : > { %p982_p0 = pneg %p981_p2 }
 0x342   : > { %p988_p6 = por %p987_p4, %p986_p1 }
 0x344   : > { %p989_p8 = pnand %p988_p6, %p982_p0 }
 0x346   : > { %992 = shalt.err (!%p989_p8)
}
 0x347   : > { %s1054_s23 = smov 64   ;;  %s1055_s21 = smov 4  }
 0x348   : > { %839 = dma.vmem_to_hbm [thread:$0]  (%p1172_p12), %s1514_s9, 128, %s1519_s10, %s672_s6, %s1054_s23, %s1054_s23, %s1055_s21  }
 0x349 PF: > { %s700_s28 = sand.u32 1, %s1023_s15   ;;  %p1583_p10 = scmp.ne.s32.totalorder %s1573_s22, 0 }
 0x34a   : > { %p1584_p13 = scmp.ge.s32.totalorder %s1035_s18, 2  ;;  %s701_s29 = scalar_lea.sflag [#allocation4], %s700_s28 }
 0x34c   : > { %p850_p3 = pnand %p1584_p13, %p1583_p10 }
 0x34e   : > { %1018 = dma.done.wait (!%p850_p3), %s701_s29, 128  }
 0x34f   : > { %1020 = vsyncadd (!%p850_p3), %s701_s29, 4294967168  ;;  %p18_p7 = scmp.ge.s32.totalorder %s1137_s27, 4   ;;  %s1585_s15 = smov %s1027_s16 }
 0x350   : > { %s1586_s16 = smov %s1031_s17  ;;  %s1587_s17 = smov %s1168_s24 }
 0x351   : > { %s1588_s18 = smov %s1137_s27  ;;  %20 = sbr.rel (!%p18_p7) target bundleno = 6 (0x6), region = 96 }
 0x358   :  { %706 = vsyncpa [#allocation3], 1 }
 0x359   :  { %708 = vsyncpa [#allocation3 + $0x1], 1 }
 0x35a   :  { %709 = vsyncpa [#allocation6], 1 }
 0x35b   :  { %710 = vsyncpa [#allocation4], 1 }
 0x35c   :  { %712 = vsyncpa [#allocation4 + $0x1], 1 }

</bundles_post_ra>
